<compile_context>
chip_gen: v5e
topology: v5e:2x2
jax: 0.10.0
libtpu: 0.0.40
codegen_flags: <defaults>
</compile_context>

<pallas_src>
import functools

import jax
import jax.numpy as jnp
from jax import lax
from jax.experimental import pallas as pl
from jax.experimental.pallas import tpu as pltpu

EPS = 1e-09

_LANES = 128
_SUBLANES = 8
_MAX_ROWS_PER_STEP = 1024   # 1024 x 128 f32 = 512 KiB per input per grid step
_CHUNK_ROWS = 64            # 8 vregs per tensor per inner-loop chunk
_MIN_SPLIT_ROWS = 256       # only split B==1 reductions across 2 accumulators
                            # (v7x dual-TC) when the image is big enough


def _cdiv(a, b):
    return -(-a // b)


def _round_up(a, m):
    return _cdiv(a, m) * m


def _bce_kernel(x_ref, t_ref, out_ref, *, eps, n_elems, rows, th, bps,
                chunk_rows, mask_mode, binary_targets):
    """One grid step.

    x_ref/t_ref: (bt, th, 128) tile covering rows [row0, row0+th) of `bt`
    images.  out_ref: resident (bt, 8, 128) per-image partial-sum accumulator
    (constant across the innermost "arbitrary" reduction axis).
    """
    p = pl.program_id(1)          # parallel split of the reduction (v7x B==1)
    r = pl.program_id(2)          # sequential reduction blocks

    @pl.when(r == 0)
    def _init():
        out_ref[...] = jnp.zeros_like(out_ref)

    row0 = (p * bps + r) * th     # global row index of this block's first row

    def tile_loss(x, t):
        x = x.astype(jnp.float32)
        t = t.astype(jnp.float32)
        if binary_targets:
            # Hard {0,1} targets: one transcendental per element (EUP relief).
            return -jnp.log(jnp.where(t > 0.5, x, 1.0 - x) + eps)
        return -t * jnp.log(x + eps) - (1.0 - t) * jnp.log(1.0 - x + eps)

    def accum(row_start, c):
        # rows [row_start, row_start + c) of this block; c is static.
        x = x_ref[:, pl.ds(row_start, c), :]
        t = t_ref[:, pl.ds(row_start, c), :]
        loss = tile_loss(x, t)                              # (bt, c, 128) f32

        if mask_mode != "none":
            # Zero the loss of padded / out-of-bounds elements (select, so any
            # garbage/NaN from OOB reads cannot propagate).  Only emitted when
            # the shape actually needs it.
            ridx = lax.broadcasted_iota(jnp.int32, (c, _LANES), 0)
            ridx = ridx + (row0 + row_start)
            if mask_mode == "elem":
                lidx = lax.broadcasted_iota(jnp.int32, (c, _LANES), 1)
                ok = (ridx * _LANES + lidx) < n_elems
            else:  # "row": only whole out-of-range rows need masking
                ok = ridx < rows
            loss = jnp.where(ok[None, :, :], loss, 0.0)

        bt = loss.shape[0]
        full8 = (c // _SUBLANES) * _SUBLANES
        if full8:
            # (bt, full8, 128) -> (bt, full8/8, 8, 128): each inner (8,128) is
            # one native tile, so the reshape is free and the reduction over
            # axis 1 is pure-VPU vreg adds.
            part = loss[:, :full8, :].reshape(bt, full8 // _SUBLANES,
                                              _SUBLANES, _LANES)
            out_ref[...] += part.sum(axis=1)
        rem = c - full8
        if rem:
            out_ref[:, :rem, :] += loss[:, full8:, :]

    n_full = th // chunk_rows
    tail = th - n_full * chunk_rows
    if n_full:
        def body(i, carry):
            accum(pl.multiple_of(i * chunk_rows, _SUBLANES), chunk_rows)
            return carry
        lax.fori_loop(0, n_full, body, 0, unroll=True)
    if tail:
        accum(n_full * chunk_rows, tail)


def binary_cross_entropy(input, target, pointmap=None, n_objects=None,
                         batch_mean=True, eps=EPS, binary_targets=False):
    """Matches BinaryCrossEntropy.forward.

    Args:
      input:  (B, 1, H, W) probabilities (any float dtype; bf16 halves HBM
              traffic on the HBM-bound v5e/v6e -- cast at the producer).
      target: (B, H, W) targets (any float/bool dtype).
      pointmap, n_objects: unused by the reference forward (API parity only).
      binary_targets: if True, use the single-log formulation (valid only for
              hard {0,1} targets; exactly equal to the reference there).
    """
    B, C, H, W = input.shape
    assert C == 1

    n = H * W
    rows = _cdiv(n, _LANES)
    n_pad = rows * _LANES

    # Flatten; pad only to the next multiple of 128 lanes (and only when
    # needed).  For 128-aligned n this is copy-free (contiguous reshape).
    inp = input.reshape(B, n)
    tgt = target.reshape(B, n)
    if n_pad != n:
        # TODO(synk): a fully copy-free path for n % 128 != 0 needs manual DMA
        # of the ragged tail; the pad here is < 128 elements per image.
        inp = jnp.pad(inp, ((0, 0), (0, n_pad - n)))
        tgt = jnp.pad(tgt, ((0, 0), (0, n_pad - n)))
    inp = inp.reshape(B, rows, _LANES)
    tgt = tgt.reshape(B, rows, _LANES)

    # ---- tiling choices -----------------------------------------------------
    # Pack multiple small images per grid step so each step moves >= ~512 KiB.
    if rows <= _MAX_ROWS_PER_STEP and B > 1:
        bt = max(1, min(B, _MAX_ROWS_PER_STEP // rows))
        while B % bt:
            bt -= 1
    else:
        bt = 1

    if bt > 1:
        n_split, blocks_total, th = 1, 1, rows
    else:
        blocks_needed = _cdiv(rows, _MAX_ROWS_PER_STEP)
        # B == 1: split the reduction across 2 parallel accumulators so both
        # v7x TensorCores get work (no effect on v5e/v6e).
        n_split = 2 if (B == 1 and rows >= 2 * _MIN_SPLIT_ROWS) else 1
        blocks_total = _round_up(blocks_needed, n_split)
        if blocks_total == 1:
            th = rows                      # block == full dim: no row padding
        else:
            th = _round_up(_cdiv(rows, blocks_total), _SUBLANES)
            if (blocks_total - 1) * th >= rows:
                # keep every grid block at least partially in-bounds
                n_split = 1
                blocks_total = blocks_needed
                th = rows if blocks_total == 1 else _round_up(
                    _cdiv(rows, blocks_total), _SUBLANES)
    bps = blocks_total // n_split

    covered_rows = blocks_total * th
    if n_pad != n:
        mask_mode = "elem"
    elif covered_rows != rows:
        mask_mode = "row"
    else:
        mask_mode = "none"

    grid = (B // bt, n_split, bps)

    bytes_accessed = (inp.size * inp.dtype.itemsize
                      + tgt.size * tgt.dtype.itemsize
                      + B * n_split * _SUBLANES * _LANES * 4)
    flops_per_elem = 5 if binary_targets else 10
    trans_per_elem = 1 if binary_targets else 2

    out = pl.pallas_call(
        functools.partial(
            _bce_kernel, eps=eps, n_elems=n, rows=rows, th=th, bps=bps,
            chunk_rows=_CHUNK_ROWS, mask_mode=mask_mode,
            binary_targets=binary_targets),
        out_shape=jax.ShapeDtypeStruct((B * n_split, _SUBLANES, _LANES),
                                       jnp.float32),
        grid_spec=pltpu.PrefetchScalarGridSpec(
            num_scalar_prefetch=0,
            grid=grid,
            in_specs=[
                pl.BlockSpec((bt, th, _LANES),
                             lambda g, p, r, bps=bps: (g, p * bps + r, 0)),
                pl.BlockSpec((bt, th, _LANES),
                             lambda g, p, r, bps=bps: (g, p * bps + r, 0)),
            ],
            out_specs=pl.BlockSpec(
                (bt, _SUBLANES, _LANES),
                lambda g, p, r, ns=n_split: (g * ns + p, 0, 0)),
        ),
        compiler_params=pltpu.CompilerParams(
            # Batch axis and the accumulator-split axis can be spread across
            # TensorCores; only the in-image reduction axis stays sequential.
            dimension_semantics=("parallel", "parallel", "arbitrary"),
            # Live VMEM is ~2-3 MiB (2 inputs x 2 buffers x <=512 KiB + tiny
            # output); stay well under every generation's limits.
            vmem_limit_bytes=32 * 1024 * 1024,
        ),
        cost_estimate=pl.CostEstimate(
            flops=flops_per_elem * B * n_pad,
            transcendentals=trans_per_elem * B * n_pad,
            bytes_accessed=bytes_accessed,
        ),
    )(inp, tgt)

    # Final cross-lane reduce of the per-image (n_split, 8, 128) partials.
    per_batch = out.reshape(B, -1).sum(axis=1)     # (B,)

    if batch_mean:
        return jnp.mean(per_batch)
    return per_batch


def _reference(input, target, batch_mean=True, eps=EPS):
    x = jnp.squeeze(input, axis=1).astype(jnp.float32)
    t = target.astype(jnp.float32)
    loss = -t * jnp.log(x + eps) - (1.0 - t) * jnp.log(1.0 - x + eps)
    loss = loss.sum(axis=1).sum(axis=1)
    if batch_mean:
        loss = loss.mean(axis=0)
    return loss


if __name__ == "__main__":
    key = jax.random.PRNGKey(0)

    # (B, H, W, dtype): small packed images, a padded (non-128-multiple) case,
    # a lane-exact big image, a B==1 case (exercises the 2-way accumulator
    # split), a multi-reduction-block case, and a bf16-streaming case.
    cases = [
        (2, 16, 16, jnp.float32),
        (2, 20, 20, jnp.float32),
        (2, 384, 200, jnp.float32),
        (1, 384, 200, jnp.float32),
        (2, 512, 512, jnp.float32),
        (2, 64, 64, jnp.bfloat16),
    ]

    ok = True
    for (B, H, W, dtype) in cases:
        key, k1, k2 = jax.random.split(key, 3)
        inp = jax.random.uniform(k1, (B, 1, H, W), jnp.float32,
                                 minval=0.01, maxval=0.99).astype(dtype)
        tgt = jax.random.bernoulli(k2, 0.5, (B, H, W)).astype(dtype)

        # Unused by forward but part of the module's signature.
        pointmap = jnp.zeros((B, H, W), jnp.float32)
        n_objects = jnp.ones((B,), jnp.int32)

        loss = jax.block_until_ready(
            binary_cross_entropy(inp, tgt, pointmap, n_objects,
                                 batch_mean=True))
        ref = _reference(inp, tgt, batch_mean=True)
        if not jnp.allclose(loss, ref, rtol=1e-4, atol=1e-2):
            print("MISMATCH mean", (B, H, W, dtype), loss, ref)
            ok = False

        loss_vec = jax.block_until_ready(
            binary_cross_entropy(inp, tgt, pointmap, n_objects,
                                 batch_mean=False))
        ref_vec = _reference(inp, tgt, batch_mean=False)
        if not jnp.allclose(loss_vec, ref_vec, rtol=1e-4, atol=1e-2):
            print("MISMATCH vec", (B, H, W, dtype), loss_vec, ref_vec)
            ok = False

    # Single-log path (hard {0,1} targets only) -- must match the reference.
    B, H, W = 2, 384, 200
    key, k1, k2 = jax.random.split(key, 3)
    inp = jax.random.uniform(k1, (B, 1, H, W), jnp.float32,
                             minval=0.01, maxval=0.99)
    tgt = jax.random.bernoulli(k2, 0.5, (B, H, W)).astype(jnp.float32)
    loss = jax.block_until_ready(
        binary_cross_entropy(inp, tgt, None, None, batch_mean=True,
                             binary_targets=True))
    ref = _reference(inp, tgt, batch_mean=True)
    if not jnp.allclose(loss, ref, rtol=1e-4, atol=1e-2):
        print("MISMATCH binary_targets", loss, ref)
        ok = False

    if ok:
        print("KERNEL_OK")
</pallas_src>

<mosaic_0001>
module attributes {stable_mosaic.version = 11 : i64} {
  func.func @_bce_kernel(%arg0: i32, %arg1: i32, %arg2: i32, %arg3: memref<2x2x128xf32, #tpu.memory_space<vmem>>, %arg4: memref<2x2x128xf32, #tpu.memory_space<vmem>>, %arg5: memref<2x8x128xf32, #tpu.memory_space<vmem>>) attributes {dimension_semantics = [#tpu.dimension_semantics<parallel>, #tpu.dimension_semantics<parallel>, #tpu.dimension_semantics<arbitrary>], iteration_bounds = array<i64: 1, 1, 1>, scalar_prefetch = 0 : i64, scratch_operands = 0 : i64, tpu.core_type = #tpu.core_type<tc>, window_params = [{transform_indices = @transform_0, window_bounds = array<i64: 2, 2, 128>}, {transform_indices = @transform_1, window_bounds = array<i64: 2, 2, 128>}, {transform_indices = @transform_2, window_bounds = array<i64: 2, 8, 128>}]} {
    %c0_i32 = arith.constant 0 : i32
    %0 = arith.cmpi eq, %arg2, %c0_i32 : i32
    %1 = arith.extui %0 : i1 to i32
    %c0_i32_0 = arith.constant 0 : i32
    %2 = arith.cmpi ne, %1, %c0_i32_0 : i32
    scf.if %2 {
      %cst_16 = arith.constant 0.000000e+00 : f32
      %23 = vector.broadcast %cst_16 : f32 to vector<2x8x128xf32>
      %c0_17 = arith.constant 0 : index
      %c0_18 = arith.constant 0 : index
      %c0_19 = arith.constant 0 : index
      %24 = vector.load %arg5[%c0_17, %c0_18, %c0_19] : memref<2x8x128xf32, #tpu.memory_space<vmem>>, vector<2x8x128xf32>
      tpu.vector_store %arg5[%c0_17, %c0_18, %c0_19], %23 {strides = array<i32>} : memref<2x8x128xf32, #tpu.memory_space<vmem>>, vector<2x8x128xf32>,
    } else {
    }
    %c0 = arith.constant 0 : index
    %c0_1 = arith.constant 0 : index
    %c0_2 = arith.constant 0 : index
    %3 = vector.load %arg3[%c0, %c0_1, %c0_2] : memref<2x2x128xf32, #tpu.memory_space<vmem>>, vector<2x2x128xf32>
    %c0_3 = arith.constant 0 : index
    %c0_4 = arith.constant 0 : index
    %c0_5 = arith.constant 0 : index
    %4 = vector.load %arg4[%c0_3, %c0_4, %c0_5] : memref<2x2x128xf32, #tpu.memory_space<vmem>>, vector<2x2x128xf32>
    %cst = arith.constant 0.000000e+00 : f32
    %5 = vector.broadcast %cst : f32 to vector<2x2x128xf32>
    %6 = arith.subf %5, %4 : vector<2x2x128xf32>
    %cst_6 = arith.constant 9.99999971E-10 : f32
    %7 = vector.broadcast %cst_6 : f32 to vector<2x2x128xf32>
    %8 = arith.addf %3, %7 : vector<2x2x128xf32>
    %9 = math.log %8 : vector<2x2x128xf32>
    %10 = arith.mulf %6, %9 : vector<2x2x128xf32>
    %cst_7 = arith.constant 1.000000e+00 : f32
    %11 = vector.broadcast %cst_7 : f32 to vector<2x2x128xf32>
    %12 = arith.subf %11, %4 : vector<2x2x128xf32>
    %cst_8 = arith.constant 1.000000e+00 : f32
    %13 = vector.broadcast %cst_8 : f32 to vector<2x2x128xf32>
    %14 = arith.subf %13, %3 : vector<2x2x128xf32>
    %cst_9 = arith.constant 9.99999971E-10 : f32
    %15 = vector.broadcast %cst_9 : f32 to vector<2x2x128xf32>
    %16 = arith.addf %14, %15 : vector<2x2x128xf32>
    %17 = math.log %16 : vector<2x2x128xf32>
    %18 = arith.mulf %12, %17 : vector<2x2x128xf32>
    %19 = arith.subf %10, %18 : vector<2x2x128xf32>
    %c0_10 = arith.constant 0 : index
    %c0_11 = arith.constant 0 : index
    %c0_12 = arith.constant 0 : index
    %20 = vector.load %arg5[%c0_10, %c0_11, %c0_12] : memref<2x8x128xf32, #tpu.memory_space<vmem>>, vector<2x2x128xf32>
    %21 = arith.addf %20, %19 : vector<2x2x128xf32>
    %c0_13 = arith.constant 0 : index
    %c0_14 = arith.constant 0 : index
    %c0_15 = arith.constant 0 : index
    %22 = vector.load %arg5[%c0_13, %c0_14, %c0_15] : memref<2x8x128xf32, #tpu.memory_space<vmem>>, vector<2x2x128xf32>
    tpu.vector_store %arg5[%c0_13, %c0_14, %c0_15], %21 {strides = array<i32>} : memref<2x8x128xf32, #tpu.memory_space<vmem>>, vector<2x2x128xf32>,
    return
  }
  func.func @transform_0(%arg0: i32, %arg1: i32, %arg2: i32) -> (i32, i32, i32) {
    %c1_i32 = arith.constant 1 : i32
    %0 = arith.muli %arg1, %c1_i32 : i32
    %1 = arith.addi %0, %arg2 : i32
    %c0_i32 = arith.constant 0 : i32
    %c0_i32_0 = arith.constant 0 : i32
    return %arg0, %1, %c0_i32 : i32, i32, i32
  }
  func.func @transform_1(%arg0: i32, %arg1: i32, %arg2: i32) -> (i32, i32, i32) {
    %c1_i32 = arith.constant 1 : i32
    %0 = arith.muli %arg1, %c1_i32 : i32
    %1 = arith.addi %0, %arg2 : i32
    %c0_i32 = arith.constant 0 : i32
    %c0_i32_0 = arith.constant 0 : i32
    return %arg0, %1, %c0_i32 : i32, i32, i32
  }
  func.func @transform_2(%arg0: i32, %arg1: i32, %arg2: i32) -> (i32, i32, i32) {
    %c1_i32 = arith.constant 1 : i32
    %0 = arith.muli %arg0, %c1_i32 : i32
    %1 = arith.addi %0, %arg1 : i32
    %c0_i32 = arith.constant 0 : i32
    %c0_i32_0 = arith.constant 0 : i32
    %c0_i32_1 = arith.constant 0 : i32
    return %1, %c0_i32, %c0_i32_0 : i32, i32, i32
  }
}

</mosaic_0001>

<bundles_post_ra>
// kernel: tpu_custom_call.1
= control target key start
LH: loop header
LB: loop body
LE: loop exit
PB: predicated region body
PF: predicated region fallthrough
CT: control target
= control target key end

     0   :  { %7 = vsyncpa [#allocation3], 0  ;;  %s244_s0 = inlined_call_operand.hbm [shape: f32[2,2,128], index: 0, kind: input, shape index: {}]   ;;  %s245_s1 = inlined_call_operand.hbm [shape: f32[2,2,128], index: 1, kind: input, shape index: {}]   ;;  %s246_s2 = inlined_call_operand.hbm [shape: f32[2,8,128], index: 2, kind: output, shape index: {}]  }
   0x1   :  { %8 = vsyncpa [#allocation6], 0 }
   0x2   :  { %9 = vsyncpa [#allocation4], 0  ;;  %s17_s11 = sshll.u32 %s244_s0, 4  ;;  %s212_s12 = smov [#allocation2]   ;;  %s18_s11 = int_to_ptr.hbm [resolvable:$true] %s17_s11 }
   0x3   :  { %s19_s13 = sshll.u32 %s212_s12, 4  ;;  %s33_s16 = sshll.u32 %s245_s1, 4  ;;  %s20_s13 = int_to_ptr.vmem [resolvable:$true] %s19_s13  ;;  %s34_s16 = int_to_ptr.hbm [resolvable:$true] %s33_s16 }
   0x4   :  { %s213_s17 = smov 32   ;;  %s214_s18 = smov 2  }
   0x5   :  { %25 = dma.hbm_to_vmem [thread:$0]  %s18_s11, 64, %s20_s13, [#allocation3], %s213_s17, %s213_s17, %s214_s18  }
   0x6   :  { %s215_s19 = smov [#allocation5]  }
   0x7   :  { %s35_s20 = sshll.u32 %s215_s19, 4  ;;  %s36_s20 = int_to_ptr.vmem [resolvable:$true] %s35_s20 }
   0x8   :  { %41 = dma.hbm_to_vmem [thread:$0]  %s34_s16, 64, %s36_s20, [#allocation6], %s213_s17, %s213_s17, %s214_s18  }
   0x9   :  { %206 = dma.done.wait [#allocation3], 64  }
   0xa   :  { %207 = vsyncadd [#allocation3], 4294967232 }
   0xb   :  { %208 = dma.done.wait [#allocation6], 64  }
   0xc   :  { %209 = vsyncadd [#allocation6], 4294967232  ;;  %v216_v0 = vmov 0.0   ;;  %v60_v1 = vld [vmem:[#allocation2] sm:$0x3]  ;;  %s217_s0 = smov [#allocation7]  }
   0xd   :  { %58 = vst [vmem:[#allocation7] sm:$0xff] %v216_v0  ;;  %v66_v2 = vadd.f32 1e-09, %v60_v1  ;;  %v76_v3 = vsub.f32 1.0, %v60_v1  ;;  %v61_v4 = vld [vmem:[#allocation2 + $0x2] sm:$0x3] }
   0xe   :  { %59 = vst [vmem:[#allocation7 + $0x8] sm:$0xff] %v216_v0  ;;  %v67_v5 = vadd.f32 1e-09, %v61_v4  ;;  %v77_v7 = vsub.f32 1.0, %v61_v4  ;;  %v62_v8 = vld [vmem:[#allocation5] sm:$0x3] }
   0xf   :  { %126 = vlog2.f32 %v66_v2  ;;  %v78_v6 = vadd.f32 1e-09, %v76_v3  ;;  %v64_v10 = vsub.f32 0.0, %v62_v8  ;;  %v63_v11 = vld [vmem:[#allocation5 + $0x2] sm:$0x3]  ;;  %v74_v15 = vsub.f32 1.0, %v62_v8 }
  0x10   :  { %128 = vlog2.f32 %v67_v5  ;;  %v79_v9 = vadd.f32 1e-09, %v77_v7  ;;  %v65_v17 = vsub.f32 0.0, %v63_v11  ;;  %v75_v21 = vsub.f32 1.0, %v63_v11  ;;  %s102_s1 = sshll.u32 %s217_s0, 4  ;;  %s104_s23 = sshll.u32 %s246_s2, 4  ;;  %s103_s1 = int_to_ptr.vmem [resolvable:$true] %s102_s1  ;;  %s105_s23 = int_to_ptr.hbm [resolvable:$true] %s104_s23 }
  0x11   :  { %130 = vlog2.f32 %v78_v6  ;;  %s218_s24 = smov 128   ;;  %s219_s25 = smov 8  }
  0x12   :  { %132 = vlog2.f32 %v79_v9 }
  0x14   :  { %v88_v24 = vld [vmem:[#allocation7] sm:$0x3] }
  0x15   :  { %v127_v12 = vpop.eup %126  ;;  %v89_v30 = vld [vmem:[#allocation7 + $0x8] sm:$0x3] }
  0x16   :  { %v129_v13 = vpop.eup %128  ;;  %v69_v14 = vmul.f32 0.6931472, %v127_v12 }
  0x17   :  { %v131_v16 = vpop.eup %130  ;;  %v71_v18 = vmul.f32 0.6931472, %v129_v13 }
  0x18   :  { %v72_v19 = vmul.f32 %v69_v14, %v64_v10  ;;  %v81_v20 = vmul.f32 0.6931472, %v131_v16  ;;  %v133_v22 = vpop.eup %132 }
  0x19   :  { %v73_v25 = vmul.f32 %v71_v18, %v65_v17  ;;  %v83_v26 = vmul.f32 0.6931472, %v133_v22 }
  0x1a   :  { %v84_v23 = vmul.f32 %v81_v20, %v74_v15 }
  0x1b   :  { %v85_v28 = vmul.f32 %v83_v26, %v75_v21 }
  0x1c   :  { %v86_v27 = vsub.f32 %v72_v19, %v84_v23 }
  0x1d   :  { %v87_v31 = vsub.f32 %v73_v25, %v85_v28 }
  0x1e   :  { %v90_v29 = vadd.f32 %v88_v24, %v86_v27 }
  0x1f   :  { %v91_v32 = vadd.f32 %v89_v30, %v87_v31 }
  0x20   :  { %92 = vst [vmem:[#allocation7] sm:$0x3] %v90_v29 }
  0x21   :  { %93 = vst [vmem:[#allocation7 + $0x8] sm:$0x3] %v91_v32 }
  0x22   :  { %110 = dma.vmem_to_hbm [thread:$0]  %s103_s1, 256, %s105_s23, [#allocation4], %s218_s24, %s218_s24, %s219_s25  }
  0x23   :  { %210 = dma.done.wait [#allocation4], 256  }
  0x24   :  { %211 = vsyncadd [#allocation4], 4294967040 }
  0x25   :  { %115 = vsyncpa [#allocation3], 1 }
  0x26   :  { %116 = vsyncpa [#allocation6], 1 }
  0x27   :  { %117 = vsyncpa [#allocation4], 1 }

</bundles_post_ra>
